<compile_context>
chip_gen: v7x
topology: tpu7x:2x2x1
jax: 0.10.0
libtpu: 0.0.40
codegen_flags: <defaults>
</compile_context>

<pallas_src>
import math

import jax
import jax.numpy as jnp
from jax.experimental import pallas as pl
from jax.experimental.pallas import tpu as pltpu

OUT_PAD = 128   # lane-dense padded output width (n_actions -> 128 lanes)
MAX_TB = 1024   # largest batch tile (HBM roofline ~saturated at 512-1024)


def _cdiv(a, b):
    return -(-a // b)


def _round_up(x, m):
    return ((x + m - 1) // m) * m


def actor_kernel(x_ref, w1_ref, b1_ref, w2_ref, b2_ref, w3_ref, b3_ref, o_ref):
    # bf16 x bf16 dots (single-pass MXU format on v5e/v6e/v7x) with f32
    # accumulation; bias / ReLU / tanh stay on the f32 VPU / EUP path.
    x = x_ref[...].astype(jnp.bfloat16)

    # fc1 + ReLU
    h1 = jnp.dot(x, w1_ref[...], preferred_element_type=jnp.float32) + b1_ref[...]
    h1 = jnp.maximum(h1, 0.0).astype(jnp.bfloat16)

    # fc2 + ReLU
    h2 = jnp.dot(h1, w2_ref[...], preferred_element_type=jnp.float32) + b2_ref[...]
    h2 = jnp.maximum(h2, 0.0).astype(jnp.bfloat16)

    # output layer + tanh (padded output lanes are tanh(0) = 0, sliced outside)
    out = jnp.dot(h2, w3_ref[...], preferred_element_type=jnp.float32) + b3_ref[...]
    o_ref[...] = jnp.tanh(out).astype(o_ref.dtype)


def actor_forward(state, params):
    """state: [B, input_dim] f32; params: dict of (w1,b1,w2,b2,w3,b3), weights [in,out]."""
    w1, b1 = params["w1"], params["b1"]
    w2, b2 = params["w2"], params["b2"]
    w3, b3 = params["w3"], params["b3"]

    B, in_dim = state.shape
    fc1 = w1.shape[1]
    fc2 = w2.shape[1]
    n_actions = w3.shape[1]

    # ---- lane-dense output: pad last layer to 128 output lanes -------------
    w3p = jnp.zeros((fc2, OUT_PAD), jnp.float32).at[:, :n_actions].set(w3)
    b3p = jnp.zeros((1, OUT_PAD), jnp.float32).at[:, :n_actions].set(b3)

    # ---- bf16 weights (weight-DMA bound at small batch), f32 biases --------
    w1b = w1.astype(jnp.bfloat16)
    w2b = w2.astype(jnp.bfloat16)
    w3b = w3p.astype(jnp.bfloat16)

    # ---- batch tiling -------------------------------------------------------
    # Pick the number of tiles first (>=2 when B is large so v7x megacore has
    # work on both TCs), then size TB from cdiv(B, num_tiles) to avoid padding
    # a whole extra tile at awkward batch sizes.
    Bq = max(B, 1)
    num_tiles = _cdiv(Bq, MAX_TB)
    if Bq > 256:
        num_tiles = max(num_tiles, 2)
    TB = _round_up(_cdiv(Bq, num_tiles), 8)
    B_pad = TB * num_tiles
    if B_pad != B:
        state = jnp.pad(state, ((0, B_pad - B), (0, 0)))
    grid = (num_tiles,)

    # ---- output writeback: bf16 at training-size batches --------------------
    # At B in the thousands the f32 [B,128] writeback dominates HBM traffic;
    # bf16 halves it. At small B the weight DMA dominates, so keep f32.
    out_dtype = jnp.bfloat16 if B_pad >= 1024 else jnp.float32
    out_itemsize = jnp.dtype(out_dtype).itemsize

    cost = pl.CostEstimate(
        flops=2 * B_pad * (in_dim * fc1 + fc1 * fc2 + fc2 * OUT_PAD),
        transcendentals=B_pad * OUT_PAD,  # tanh
        bytes_accessed=(2 * (w1b.size + w2b.size + w3b.size)        # bf16 weights
                        + 4 * (b1.size + b2.size + b3p.size)        # f32 biases
                        + 4 * state.size                            # f32 input
                        + out_itemsize * B_pad * OUT_PAD),          # output
    )

    x_map = lambda i: (i, 0)
    const = lambda i: (0, 0)
    # Constant-index (grid-resident) blocks never change -> single buffer.
    resident = dict(pipeline_mode=pl.Buffered(1))

    out = pl.pallas_call(
        actor_kernel,
        out_shape=jax.ShapeDtypeStruct((B_pad, OUT_PAD), out_dtype),
        grid=grid,
        in_specs=[
            pl.BlockSpec((TB, in_dim), x_map),                  # x tile
            pl.BlockSpec((in_dim, fc1), const, **resident),     # w1 (resident)
            pl.BlockSpec((1, fc1), const, **resident),          # b1
            pl.BlockSpec((fc1, fc2), const, **resident),        # w2
            pl.BlockSpec((1, fc2), const, **resident),          # b2
            pl.BlockSpec((fc2, OUT_PAD), const, **resident),    # w3 (padded)
            pl.BlockSpec((1, OUT_PAD), const, **resident),      # b3 (padded)
        ],
        out_specs=pl.BlockSpec((TB, OUT_PAD), x_map),
        compiler_params=pltpu.CompilerParams(
            dimension_semantics=("parallel",),                  # megacore on v7x
        ),
        cost_estimate=cost,
    )(state, w1b, b1, w2b, b2, w3b, b3p)

    # TODO(synk): for the per-env-step B~2 inference path the kernel is launch +
    # weight-DMA latency bound; amortize by batching rollouts or keeping weights
    # VMEM-resident across calls (cross-call prefetch), not by in-kernel changes.
    return out[:B, :n_actions].astype(jnp.float32)


def init_params(key, input_dim, fc1_dims=256, fc2_dims=128, n_actions=2):
    """PyTorch-style uniform(-1/sqrt(fan_in), 1/sqrt(fan_in)) init.

    Weights are stored already transposed to [in, out] so the kernel computes
    y = x @ W + b (equivalent to PyTorch x @ W.T + b)."""
    ks = jax.random.split(key, 6)

    def lin(kw, kb, fan_in, fan_out):
        bound = 1.0 / math.sqrt(fan_in)
        w = jax.random.uniform(kw, (fan_in, fan_out), jnp.float32, -bound, bound)
        b = jax.random.uniform(kb, (1, fan_out), jnp.float32, -bound, bound)
        return w, b

    w1, b1 = lin(ks[0], ks[1], input_dim, fc1_dims)
    w2, b2 = lin(ks[2], ks[3], fc1_dims, fc2_dims)
    w3, b3 = lin(ks[4], ks[5], fc2_dims, n_actions)
    return dict(w1=w1, b1=b1, w2=w2, b2=b2, w3=w3, b3=b3)


def reference_forward(state, params):
    """Pure-JAX mirror of the kernel math: bf16 weights AND bf16 activations
    at each dot, f32 accumulation, f32 bias/ReLU/tanh."""
    w1b = params["w1"].astype(jnp.bfloat16)
    w2b = params["w2"].astype(jnp.bfloat16)
    w3b = params["w3"].astype(jnp.bfloat16)
    h1 = jnp.dot(state.astype(jnp.bfloat16), w1b,
                 preferred_element_type=jnp.float32) + params["b1"]
    h1 = jnp.maximum(h1, 0.0)
    h2 = jnp.dot(h1.astype(jnp.bfloat16), w2b,
                 preferred_element_type=jnp.float32) + params["b2"]
    h2 = jnp.maximum(h2, 0.0)
    out = jnp.dot(h2.astype(jnp.bfloat16), w3b,
                  preferred_element_type=jnp.float32) + params["b3"]
    return jnp.tanh(out)


if __name__ == "__main__":
    key = jax.random.PRNGKey(0)
    k_state, k_params = jax.random.split(key)

    batch = 2
    input_dim = 8          # input_dims=(8,)
    fc1_dims, fc2_dims, n_actions = 256, 128, 2

    state = jax.random.normal(k_state, (batch, input_dim), jnp.float32)
    params = init_params(k_params, input_dim, fc1_dims, fc2_dims, n_actions)

    out = actor_forward(state, params)
    out = jax.block_until_ready(out)

    ref = reference_forward(state, params)

    assert out.shape == (batch, n_actions)
    assert jnp.allclose(out, ref, atol=5e-3), "mismatch vs reference"

    print("KERNEL_OK")
</pallas_src>

<mosaic_0001>
module attributes {stable_mosaic.version = 11 : i64} {
  func.func @actor_kernel(%arg0: i32, %arg1: memref<8x8xf32, #tpu.memory_space<vmem>>, %arg2: memref<8x256xbf16, #tpu.memory_space<vmem>>, %arg3: memref<1x256xf32, #tpu.memory_space<vmem>>, %arg4: memref<256x128xbf16, #tpu.memory_space<vmem>>, %arg5: memref<1x128xf32, #tpu.memory_space<vmem>>, %arg6: memref<128x128xbf16, #tpu.memory_space<vmem>>, %arg7: memref<1x128xf32, #tpu.memory_space<vmem>>, %arg8: memref<8x128xf32, #tpu.memory_space<vmem>>) attributes {dimension_semantics = [#tpu.dimension_semantics<parallel>], iteration_bounds = array<i64: 1>, scalar_prefetch = 0 : i64, scratch_operands = 0 : i64, tpu.core_type = #tpu.core_type<tc>, window_params = [{transform_indices = @transform_0, window_bounds = array<i64: 8, 8>}, {pipeline_mode = #tpu.pipeline_mode<synchronous>, transform_indices = @transform_1, window_bounds = array<i64: 8, 256>}, {pipeline_mode = #tpu.pipeline_mode<synchronous>, transform_indices = @transform_2, window_bounds = array<i64: 1, 256>}, {pipeline_mode = #tpu.pipeline_mode<synchronous>, transform_indices = @transform_3, window_bounds = array<i64: 256, 128>}, {pipeline_mode = #tpu.pipeline_mode<synchronous>, transform_indices = @transform_4, window_bounds = array<i64: 1, 128>}, {pipeline_mode = #tpu.pipeline_mode<synchronous>, transform_indices = @transform_5, window_bounds = array<i64: 128, 128>}, {pipeline_mode = #tpu.pipeline_mode<synchronous>, transform_indices = @transform_6, window_bounds = array<i64: 1, 128>}, {transform_indices = @transform_7, window_bounds = array<i64: 8, 128>}]} {
    %c0 = arith.constant 0 : index
    %c0_0 = arith.constant 0 : index
    %0 = vector.load %arg1[%c0, %c0_0] : memref<8x8xf32, #tpu.memory_space<vmem>>, vector<8x8xf32>
    %1 = arith.truncf %0 : vector<8x8xf32> to vector<8x8xbf16>
    %c0_1 = arith.constant 0 : index
    %c0_2 = arith.constant 0 : index
    %2 = vector.load %arg2[%c0_1, %c0_2] : memref<8x256xbf16, #tpu.memory_space<vmem>>, vector<8x256xbf16>
    %cst = arith.constant dense<0.000000e+00> : vector<8x256xf32>
    %3 = tpu.matmul %1, %2, %cst {dimension_numbers = #tpu.dot_dimension_numbers<[1], [0], [0], [1], [0, 0, 1, 1], [], []>} : vector<8x8xbf16>, vector<8x256xbf16>, vector<8x256xf32> -> vector<8x256xf32>
    %c0_3 = arith.constant 0 : index
    %c0_4 = arith.constant 0 : index
    %4 = vector.load %arg3[%c0_3, %c0_4] : memref<1x256xf32, #tpu.memory_space<vmem>>, vector<1x256xf32>
    %5 = vector.broadcast %4 : vector<1x256xf32> to vector<8x256xf32>
    %6 = arith.addf %3, %5 : vector<8x256xf32>
    %cst_5 = arith.constant 0.000000e+00 : f32
    %7 = vector.broadcast %cst_5 : f32 to vector<8x256xf32>
    %8 = arith.maximumf %6, %7 : vector<8x256xf32>
    %9 = arith.truncf %8 : vector<8x256xf32> to vector<8x256xbf16>
    %c0_6 = arith.constant 0 : index
    %c0_7 = arith.constant 0 : index
    %10 = vector.load %arg4[%c0_6, %c0_7] : memref<256x128xbf16, #tpu.memory_space<vmem>>, vector<256x128xbf16>
    %cst_8 = arith.constant dense<0.000000e+00> : vector<8x128xf32>
    %11 = tpu.matmul %9, %10, %cst_8 {dimension_numbers = #tpu.dot_dimension_numbers<[1], [0], [0], [1], [0, 0, 1, 1], [], []>} : vector<8x256xbf16>, vector<256x128xbf16>, vector<8x128xf32> -> vector<8x128xf32>
    %c0_9 = arith.constant 0 : index
    %c0_10 = arith.constant 0 : index
    %12 = vector.load %arg5[%c0_9, %c0_10] : memref<1x128xf32, #tpu.memory_space<vmem>>, vector<1x128xf32>
    %13 = vector.broadcast %12 : vector<1x128xf32> to vector<8x128xf32>
    %14 = arith.addf %11, %13 : vector<8x128xf32>
    %cst_11 = arith.constant 0.000000e+00 : f32
    %15 = vector.broadcast %cst_11 : f32 to vector<8x128xf32>
    %16 = arith.maximumf %14, %15 : vector<8x128xf32>
    %17 = arith.truncf %16 : vector<8x128xf32> to vector<8x128xbf16>
    %c0_12 = arith.constant 0 : index
    %c0_13 = arith.constant 0 : index
    %18 = vector.load %arg6[%c0_12, %c0_13] : memref<128x128xbf16, #tpu.memory_space<vmem>>, vector<128x128xbf16>
    %cst_14 = arith.constant dense<0.000000e+00> : vector<8x128xf32>
    %19 = tpu.matmul %17, %18, %cst_14 {dimension_numbers = #tpu.dot_dimension_numbers<[1], [0], [0], [1], [0, 0, 1, 1], [], []>} : vector<8x128xbf16>, vector<128x128xbf16>, vector<8x128xf32> -> vector<8x128xf32>
    %c0_15 = arith.constant 0 : index
    %c0_16 = arith.constant 0 : index
    %20 = vector.load %arg7[%c0_15, %c0_16] : memref<1x128xf32, #tpu.memory_space<vmem>>, vector<1x128xf32>
    %21 = vector.broadcast %20 : vector<1x128xf32> to vector<8x128xf32>
    %22 = arith.addf %19, %21 : vector<8x128xf32>
    %23 = math.tanh %22 : vector<8x128xf32>
    %c0_17 = arith.constant 0 : index
    %c0_18 = arith.constant 0 : index
    %24 = vector.load %arg8[%c0_17, %c0_18] : memref<8x128xf32, #tpu.memory_space<vmem>>, vector<8x128xf32>
    tpu.vector_store %arg8[%c0_17, %c0_18], %23 {strides = array<i32>} : memref<8x128xf32, #tpu.memory_space<vmem>>, vector<8x128xf32>,
    return
  }
  func.func @transform_0(%arg0: i32) -> (i32, i32) {
    %c0_i32 = arith.constant 0 : i32
    %c0_i32_0 = arith.constant 0 : i32
    return %arg0, %c0_i32 : i32, i32
  }
  func.func @transform_1(%arg0: i32) -> (i32, i32) {
    %c0_i32 = arith.constant 0 : i32
    %c0_i32_0 = arith.constant 0 : i32
    %c0_i32_1 = arith.constant 0 : i32
    return %c0_i32, %c0_i32_0 : i32, i32
  }
  func.func @transform_2(%arg0: i32) -> (i32, i32) {
    %c0_i32 = arith.constant 0 : i32
    %c0_i32_0 = arith.constant 0 : i32
    %c0_i32_1 = arith.constant 0 : i32
    return %c0_i32, %c0_i32_0 : i32, i32
  }
  func.func @transform_3(%arg0: i32) -> (i32, i32) {
    %c0_i32 = arith.constant 0 : i32
    %c0_i32_0 = arith.constant 0 : i32
    %c0_i32_1 = arith.constant 0 : i32
    return %c0_i32, %c0_i32_0 : i32, i32
  }
  func.func @transform_4(%arg0: i32) -> (i32, i32) {
    %c0_i32 = arith.constant 0 : i32
    %c0_i32_0 = arith.constant 0 : i32
    %c0_i32_1 = arith.constant 0 : i32
    return %c0_i32, %c0_i32_0 : i32, i32
  }
  func.func @transform_5(%arg0: i32) -> (i32, i32) {
    %c0_i32 = arith.constant 0 : i32
    %c0_i32_0 = arith.constant 0 : i32
    %c0_i32_1 = arith.constant 0 : i32
    return %c0_i32, %c0_i32_0 : i32, i32
  }
  func.func @transform_6(%arg0: i32) -> (i32, i32) {
    %c0_i32 = arith.constant 0 : i32
    %c0_i32_0 = arith.constant 0 : i32
    %c0_i32_1 = arith.constant 0 : i32
    return %c0_i32, %c0_i32_0 : i32, i32
  }
  func.func @transform_7(%arg0: i32) -> (i32, i32) {
    %c0_i32 = arith.constant 0 : i32
    %c0_i32_0 = arith.constant 0 : i32
    return %arg0, %c0_i32 : i32, i32
  }
}

</mosaic_0001>

<bundles_post_ra>
// kernel: tpu_custom_call.1
= control target key start
LH: loop header
LB: loop body
LE: loop exit
PB: predicated region body
PF: predicated region fallthrough
CT: control target
= control target key end

     0   :  { %12 = vsyncpa [#allocation3], 0  ;;  %s818_s0 = inlined_call_operand.hbm [shape: f32[8,8], index: 0, kind: input, shape index: {}]   ;;  %s819_s1 = inlined_call_operand.hbm [shape: bf16[8,256], index: 1, kind: input, shape index: {}]   ;;  %s820_s2 = inlined_call_operand.vmem [shape: f32[1,256], index: 2, kind: input, shape index: {}]   ;;  %s821_s3 = inlined_call_operand.hbm [shape: bf16[256,128], index: 3, kind: input, shape index: {}]   ;;  %s822_s4 = inlined_call_operand.vmem [shape: f32[1,128], index: 4, kind: input, shape index: {}]   ;;  %s823_s5 = inlined_call_operand.hbm [shape: bf16[128,128], index: 5, kind: input, shape index: {}]   ;;  %s824_s6 = inlined_call_operand.vmem [shape: f32[1,128], index: 6, kind: input, shape index: {}]   ;;  %s825_s7 = inlined_call_operand.hbm [shape: f32[8,128], index: 7, kind: output, shape index: {}]  }
   0x1   :  { %13 = vsyncpa [#allocation6], 0 }
   0x2   :  { %14 = vsyncpa [#allocation9], 0 }
   0x3   :  { %15 = vsyncpa [#allocation4], 0  ;;  %s699_s24 = smov [#allocation5]   ;;  %s700_s26 = smov [#allocation2]  }
   0x4   :  { %s32_s25 = sshll.u32 %s699_s24, 4  ;;  %s22_s27 = sshll.u32 %s700_s26, 4  ;;  %s33_s25 = int_to_ptr.vmem [resolvable:$true] %s32_s25  ;;  %s23_s27 = int_to_ptr.vmem [resolvable:$true] %s22_s27 }
   0x5   :  { %s581_s30 = scalar_lea.hbm %s819_s1, 128 }
   0x6   :  { %p582_p0 = scmp.ne.s32.totalorder %s819_s1, %s581_s30  ;;  %p585_p1 = scmp.lt.u32.totalorder %s581_s30, %s819_s1 }
   0x8   :  { %p587_p2 = pnand %p585_p1, %p582_p0 }
   0xa   :  { %590 = shalt.err (!%p587_p2)
}
   0xb   :  { %s591_s12 = scalar_lea.vmem %s33_s25, 128  ;;  %p596_p4 = scmp.lt.s32.totalorder %s33_s25, %s33_s25 }
   0xc   :  { %p592_p3 = scmp.ne.s32.totalorder %s33_s25, %s591_s12  ;;  %p597_p5 = scmp.lt.s32.totalorder %s591_s12, %s591_s12 }
   0xe   :  { %p598_p6 = por %p597_p5, %p596_p4 }
  0x10   :  { %p599_p7 = pnand %p598_p6, %p592_p3 }
  0x12   :  { %602 = shalt.err (!%p599_p7)
}
  0x13   :  { %35 = dma.hbm_to_vmem [thread:$0]  %s819_s1, 128, %s33_s25, [#allocation6]  }
  0x14   :  { %s603_s17 = scalar_lea.hbm %s818_s0, 128 }
  0x15   :  { %p604_p8 = scmp.ne.s32.totalorder %s818_s0, %s603_s17  ;;  %p607_p9 = scmp.lt.u32.totalorder %s603_s17, %s818_s0 }
  0x17   :  { %p609_p10 = pnand %p607_p9, %p604_p8 }
  0x19   :  { %612 = shalt.err (!%p609_p10)
}
  0x1a   :  { %s613_s22 = scalar_lea.vmem %s23_s27, 128  ;;  %p618_p12 = scmp.lt.s32.totalorder %s23_s27, %s23_s27 }
  0x1b   :  { %p614_p11 = scmp.ne.s32.totalorder %s23_s27, %s613_s22  ;;  %p619_p13 = scmp.lt.s32.totalorder %s613_s22, %s613_s22 }
  0x1d   :  { %p620_p0 = por %p619_p13, %p618_p12 }
  0x1f   :  { %p621_p1 = pnand %p620_p0, %p614_p11 }
  0x21   :  { %624 = shalt.err (!%p621_p1)
}
  0x22   :  { %25 = dma.hbm_to_vmem [thread:$0]  %s818_s0, 128, %s23_s27, [#allocation3]  }
  0x23   :  { %s701_s24 = smov [#allocation7]   ;;  %s625_s29 = scalar_lea.hbm %s821_s3, 2048 }
  0x24   :  { %s43_s25 = sshll.u32 %s701_s24, 4  ;;  %p626_p2 = scmp.ne.s32.totalorder %s821_s3, %s625_s29  ;;  %s44_s25 = int_to_ptr.vmem [resolvable:$true] %s43_s25 }
  0x25   :  { %p629_p3 = scmp.lt.u32.totalorder %s625_s29, %s821_s3 }
  0x27   :  { %p631_p4 = pnand %p629_p3, %p626_p2 }
  0x29   :  { %634 = shalt.err (!%p631_p4)
}
  0x2a   :  { %s635_s11 = scalar_lea.vmem %s44_s25, 2048  ;;  %p640_p6 = scmp.lt.s32.totalorder %s44_s25, %s44_s25 }
  0x2b   :  { %p636_p5 = scmp.ne.s32.totalorder %s44_s25, %s635_s11  ;;  %p641_p7 = scmp.lt.s32.totalorder %s635_s11, %s635_s11 }
  0x2d   :  { %p642_p8 = por %p641_p7, %p640_p6 }
  0x2f   :  { %p643_p9 = pnand %p642_p8, %p636_p5 }
  0x31   :  { %646 = shalt.err (!%p643_p9)
}
  0x32   :  { %s702_s0 = smov 64   ;;  %s703_s27 = smov 4  }
  0x33   :  { %49 = dma.hbm_to_vmem [thread:$0]  %s821_s3, 2048, %s44_s25, [#allocation6], %s702_s0, %s702_s0, %s703_s27  }
  0x34   :  { %s704_s14 = smov [#allocation8]   ;;  %s647_s18 = scalar_lea.hbm %s823_s5, 1024 }
  0x35   :  { %s57_s15 = sshll.u32 %s704_s14, 4  ;;  %p648_p10 = scmp.ne.s32.totalorder %s823_s5, %s647_s18  ;;  %s58_s15 = int_to_ptr.vmem [resolvable:$true] %s57_s15 }
  0x36   :  { %p651_p11 = scmp.lt.u32.totalorder %s647_s18, %s823_s5 }
  0x38   :  { %p653_p12 = pnand %p651_p11, %p648_p10 }
  0x3a   :  { %656 = shalt.err (!%p653_p12)
}
  0x3b   :  { %s657_s1 = scalar_lea.vmem %s58_s15, 1024  ;;  %p662_p0 = scmp.lt.s32.totalorder %s58_s15, %s58_s15 }
  0x3c   :  { %p658_p13 = scmp.ne.s32.totalorder %s58_s15, %s657_s1  ;;  %p663_p1 = scmp.lt.s32.totalorder %s657_s1, %s657_s1 }
  0x3e   :  { %p664_p2 = por %p663_p1, %p662_p0 }
  0x40   :  { %p665_p3 = pnand %p664_p2, %p658_p13 }
  0x42   :  { %668 = shalt.err (!%p665_p3)
}
  0x43   :  { %63 = dma.hbm_to_vmem [thread:$0]  %s823_s5, 1024, %s58_s15, [#allocation9], %s702_s0, %s702_s0, %s703_s27  }
  0x44   :  { %691 = dma.done.wait [#allocation3], 128  }
  0x45   :  { %692 = vsyncadd [#allocation3], 4294967168 }
  0x46   :  { %693 = dma.done.wait [#allocation6], 2176  }
  0x47   :  { %694 = vsyncadd [#allocation6], 4294965120 }
  0x48   :  { %695 = dma.done.wait [#allocation9], 1024  }
  0x49   :  { %696 = vsyncadd [#allocation9], 4294966272  ;;  %v705_v0 = vmov 0   ;;  %v81_v1 = vld [vmem:[#allocation5] sm:$0xff]  ;;  %vm103_vm0 = vcmask 1043456   ;;  %v79_v2 = vld [vmem:[#allocation2] sm:$0xff]  ;;  %v84_v30 = vlaneseq }
  0x4a   :  { %142 = vmatprep.mubr.bf16.mxu0 %v705_v0  ;;  %v463_v3 = vcombine.high %v81_v1, %v81_v1  ;;  %v462_v4 = vcombine.low %v81_v1, %v81_v1  ;;  %v555_v5 = vld [vmem:[#allocation7 + $0x40] sm:$0xff]   ;;  %v80_v8 = vpack.c.bf16 %v79_v2, %v79_v2  ;;  %v557_v9 = vld [vmem:[#allocation7 + $0x48] sm:$0xff]   ;;  %vm99_vm1 = vcmask 64512   ;;  %v559_v11 = vld [vmem:[#allocation7 + $0x50] sm:$0xff]   ;;  %s708_s29 = smov [#allocation10]  }
  0x4b   :  { %v556_v6 = vld [vmem:[#allocation7] sm:$0xff]   ;;  %492 = vmatprep.subr.bf16.mxu1 %v555_v5  ;;  %v558_v10 = vld [vmem:[#allocation7 + $0x8] sm:$0xff]   ;;  %v560_v12 = vld [vmem:[#allocation7 + $0x10] sm:$0xff]   ;;  %v706_v24 = vmov 0.0   ;;  %v85_v31 = vshrl.u32 %v84_v30, 7  ;;  %vm707_vm2 = vmmov 0  }
  0x4c   :  { %464 = vmatprep.subr.msk.bf16.mxu0 %vm103_vm0, %v463_v3  ;;  %v105_v7 = vsel %vm103_vm0, %v462_v4, 0  ;;  %493 = vmatpush3.bf16.msra.mxu1 %v556_v6  ;;  %v561_v13 = vld [vmem:[#allocation7 + $0x58] sm:$0xff]   ;;  %v563_v15 = vld [vmem:[#allocation7 + $0x60] sm:$0xff]   ;;  %v565_v17 = vld [vmem:[#allocation7 + $0x68] sm:$0xff]  }
  0x4d   :  { %111 = vmatpush1.bf16.msra.mxu0 %v105_v7  ;;  %494 = vmatprep.subr.bf16.mxu1 %v557_v9  ;;  %v562_v14 = vld [vmem:[#allocation7 + $0x18] sm:$0xff]   ;;  %v564_v16 = vld [vmem:[#allocation7 + $0x20] sm:$0xff]   ;;  %v566_v18 = vld [vmem:[#allocation7 + $0x28] sm:$0xff]   ;;  %v86_v32 = vsub.s32 0, %v85_v31  ;;  %v90_v34 = vsub.s32 1, %v85_v31 }
  0x4e   :  { %v567_v19 = vld [vmem:[#allocation7 + $0x70] sm:$0xff]   ;;  %v569_v21 = vld [vmem:[#allocation7 + $0x78] sm:$0xff]   ;;  %v571_v23 = vld [vmem:[#allocation8] sm:$0xff]   ;;  %523 = vmatprep.subr.bf16.mxu0 %v706_v24 }
  0x4f   :  { %v568_v20 = vld [vmem:[#allocation7 + $0x30] sm:$0xff]   ;;  %v570_v22 = vld [vmem:[#allocation7 + $0x38] sm:$0xff]   ;;  %v572_v25 = vld [vmem:[#allocation8 + $0x8] sm:$0xff]  }
  0x50   :  { %465 = vmatmul.mubr.msk.bf16.vlgmr.msra.gmra.mrb[0].mxu0 %vm99_vm1, %v80_v8  ;;  %495 = vmatpush3.bf16.msra.mxu1 %v558_v10  ;;  %v573_v26 = vld [vmem:[#allocation8 + $0x10] sm:$0xff]   ;;  %v574_v27 = vld [vmem:[#allocation8 + $0x18] sm:$0xff]   ;;  %v575_v28 = vld [vmem:[#allocation8 + $0x20] sm:$0xff]  }
  0x51   :  { %496 = vmatprep.subr.bf16.mxu1 %v559_v11  ;;  %524 = vmatpush3.bf16.msra.mxu0 %v571_v23  ;;  %v576_v29 = vld [vmem:[#allocation8 + $0x28] sm:$0xff]   ;;  %v82_v33 = vld [vmem:[%s820_s2] sm:$0x3]  ;;  %v578_v48 = vld [vmem:[#allocation8 + $0x38] sm:$0xff]  }
  0x52   :  { %525 = vmatprep.subr.bf16.mxu0 %v706_v24  ;;  %v87_v35 = vrot.slane %v82_v33, %v86_v32  ;;  %v91_v36 = vrot.slane %v82_v33, %v90_v34  ;;  %v577_v47 = vld [vmem:[#allocation8 + $0x30] sm:$0xff]   ;;  %539 = vmatprep.mubr.msk.bf16.mxu0 %vm707_vm2, %v706_v24 }
  0x53   :  { %v466_v50 = vld [vmem:[%s822_s4] ss:$0 sm:$0xff]  ;;  %s451_s4 = sshll.u32 %s708_s29, 4  ;;  %s452_s4 = int_to_ptr.vmem [resolvable:$true] %s451_s4 }
  0x54   :  { %497 = vmatpush3.bf16.msra.mxu1 %v560_v12  ;;  %v483_v58 = vld [vmem:[%s824_s6] ss:$0 sm:$0xff]  ;;  %s669_s30 = scalar_lea.vmem %s452_s4, 128  ;;  %p674_p5 = scmp.lt.s32.totalorder %s452_s4, %s452_s4 }
  0x55   :  { %498 = vmatprep.subr.bf16.mxu1 %v561_v13  ;;  %526 = vmatpush3.bf16.msra.mxu0 %v572_v25  ;;  %p670_p4 = scmp.ne.s32.totalorder %s452_s4, %s669_s30  ;;  %p675_p6 = scmp.lt.s32.totalorder %s669_s30, %s669_s30 }
  0x56   :  { %527 = vmatprep.subr.bf16.mxu0 %v706_v24 }
  0x57   :  { %p676_p7 = por %p675_p6, %p674_p5 }
  0x58   :  { %499 = vmatpush3.bf16.msra.mxu1 %v562_v14 }
  0x59   :  { %500 = vmatprep.subr.bf16.mxu1 %v563_v15  ;;  %528 = vmatpush3.bf16.msra.mxu0 %v573_v26  ;;  %p677_p8 = pnand %p676_p7, %p670_p4 }
  0x5a   :  { %529 = vmatprep.subr.bf16.mxu0 %v706_v24 }
  0x5c   :  { %501 = vmatpush3.bf16.msra.mxu1 %v564_v16 }
  0x5d   :  { %502 = vmatprep.subr.bf16.mxu1 %v565_v17  ;;  %530 = vmatpush3.bf16.msra.mxu0 %v574_v27 }
  0x5e   :  { %531 = vmatprep.subr.bf16.mxu0 %v706_v24 }
  0x60   :  { %503 = vmatpush3.bf16.msra.mxu1 %v566_v18 }
  0x61   :  { %504 = vmatprep.subr.bf16.mxu1 %v567_v19  ;;  %532 = vmatpush3.bf16.msra.mxu0 %v575_v28 }
  0x62   :  { %533 = vmatprep.subr.bf16.mxu0 %v706_v24 }
  0x64   :  { %505 = vmatpush3.bf16.msra.mxu1 %v568_v20 }
  0x65   :  { %506 = vmatprep.subr.bf16.mxu1 %v569_v21  ;;  %534 = vmatpush3.bf16.msra.mxu0 %v576_v29 }
  0x66   :  { %535 = vmatprep.subr.bf16.mxu0 %v706_v24 }
  0x68   :  { %507 = vmatpush3.bf16.msra.mxu1 %v570_v22 }
  0x69   :  { %536 = vmatpush3.bf16.msra.mxu0 %v577_v47 }
  0x6a   :  { %537 = vmatprep.subr.bf16.mxu0 %v706_v24 }
  0x6d   :  { %538 = vmatpush3.bf16.msra.mxu0 %v578_v48 }
 0x123   :  { %v144_v37 = vpop.f32.mrb[0].mxu0 }
 0x124   :  { %v145_v38 = vadd.f32 %v144_v37, %v87_v35  ;;  %v146_v39 = vpop.f32.mrb[1].mxu0 }
 0x125   :  { %v147_v40 = vadd.f32 %v146_v39, %v91_v36  ;;  %v148_v41 = vpop.f32.mrb[2].mxu0 }
 0x126   :  { %v151_v42 = vmax.f32 %v145_v38, 0.0  ;;  %v149_v43 = vpop.f32.mrb[3].mxu0 }
 0x127   :  { %v152_v44 = vmax.f32 %v147_v40, 0.0 }
 0x128   :  { %v153_v46 = vpack.c.bf16 %v151_v42, %v151_v42 }
 0x129   :  { %v154_v45 = vpack.c.bf16 %v152_v44, %v152_v44 }
 0x12b   :  { %322 = vmatprep.mubr.bf16.mxu1 %v154_v45 }
 0x12c   :  { %323 = vmatmul.mubr.bf16.vlgmr.msra.gmra.mrb[0].mxu1 %v153_v46 }
 0x1ff   :  { %v508_v49 = vpop.f32.mrb[0].mxu1 }
 0x200   :  { %v509_v51 = vpop.f32.mrb[1].mxu1 }
 0x201   :  { %v510_v52 = vadd.f32 %v509_v51, %v508_v49  ;;  %v511_v53 = vpop.f32.mrb[2].mxu1 }
 0x202   :  { %v512_v54 = vpop.f32.mrb[3].mxu1 }
 0x203   :  { %v325_v55 = vadd.f32 %v510_v52, %v466_v50 }
 0x205   :  { %v330_v56 = vmax.f32 %v325_v55, 0.0 }
 0x207   :  { %v331_v57 = vpack.c.bf16 %v330_v56, %v330_v56 }
 0x209   :  { %540 = vmatmul.mubr.bf16.vlgmr.msra.gmra.mrb[4].mxu0 %v331_v57 }
 0x2dc   :  { %v437_v59 = vpop.f32.mrb[4].mxu0 }
 0x2dd   :  { %v438_v60 = vadd.f32 %v483_v58, %v437_v59  ;;  %v541_v61 = vpop.f32.mrb[5].mxu0 }
 0x2de   :  { %v440_v62 = vpop.f32.mrb[6].mxu0 }
 0x2df   :  { %579 = vtanh.f32 %v438_v60  ;;  %v542_v63 = vpop.f32.mrb[7].mxu0 }
 0x2e9   :  { %v580_v0 = vpop.eup %579 }
 0x2ea   :  { %444 = vst [vmem:[#allocation10] sm:$0xff] %v580_v0 }
 0x2eb   :  { %680 = shalt.err (!%p677_p8)
}
 0x2ec   :  { %s681_s9 = scalar_lea.hbm %s825_s7, 128 }
 0x2ed   :  { %p682_p9 = scmp.ne.s32.totalorder %s825_s7, %s681_s9  ;;  %p685_p10 = scmp.lt.u32.totalorder %s681_s9, %s825_s7 }
 0x2ef   :  { %p687_p11 = pnand %p685_p10, %p682_p9 }
 0x2f1   :  { %690 = shalt.err (!%p687_p11)
}
 0x2f2   :  { %454 = dma.vmem_to_hbm [thread:$0]  %s452_s4, 128, %s825_s7, [#allocation4]  }
 0x2f3   :  { %697 = dma.done.wait [#allocation4], 128  }
 0x2f4   :  { %698 = vsyncadd [#allocation4], 4294967168 }
 0x2f5   :  { %458 = vsyncpa [#allocation3], 1 }
 0x2f6   :  { %459 = vsyncpa [#allocation6], 1 }
 0x2f7   :  { %460 = vsyncpa [#allocation9], 1 }
 0x2f8   :  { %461 = vsyncpa [#allocation4], 1 }

</bundles_post_ra>
